<compile_context>
chip_gen: v6e
topology: v6e:2x2x1
jax: 0.10.0
libtpu: 0.0.40
codegen_flags: <defaults>
</compile_context>

<pallas_src>
import functools

import numpy as np
import jax
import jax.numpy as jnp
from jax.experimental import pallas as pl
from jax.experimental.pallas import tpu as pltpu


def _round_up(x, m):
    return ((x + m - 1) // m) * m


# ----------------------------- Pallas kernel -------------------------------

def _psp_bottleneck_kernel(x_ref, a_ref, cs_ref, w_ref, o_ref):
    """out = relu(x @ w + A_rows @ convstack_b); bias is folded into convstack.

    x : (rows, C)                 feats pixels (identity branch of the concat)
    a : (rows, T_pad)       bf16  per-pixel pyramid resampling weights
    cs: (1, T_pad, Cout_pad) bf16 per-image stacked pooled-conv outputs (+bias)
    w : (C, Cout_pad)       bf16  bottleneck slice for the identity branch
    o : (rows, Cout_pad)    bf16  lane-dense output
    Both matmuls hit the MXU with f32 accumulation; only the rounded bf16
    result goes back to HBM.
    """
    acc = jnp.dot(x_ref[...].astype(jnp.bfloat16), w_ref[...],
                  preferred_element_type=jnp.float32)
    acc += jnp.dot(a_ref[...], cs_ref[0], preferred_element_type=jnp.float32)
    o_ref[...] = jnp.maximum(acc, 0.0).astype(o_ref.dtype)


def _vmem_budget_bytes():
    """Generation-aware scoped-VMEM budget (leaves compiler headroom)."""
    try:
        phys = pltpu.get_tpu_info().vmem_capacity_bytes
    except Exception:
        phys = 64 << 20                        # conservative: v7x per-TensorCore
    if phys <= (64 << 20):                     # v7x: 64 MiB / TensorCore
        return min(phys - (16 << 20), 48 << 20)
    return min(phys - (28 << 20), 100 << 20)   # v5e / v6e: 128 MiB physical


def pallas_psp_bottleneck(x2d, a_mat, convstack, w_x, *, B, H, W, max_rows=2048):
    """relu(x2d @ w_x + A @ convstack[b]) fused, tiled over whole image rows.

    x2d      : (B*H*W, C)           f32 or bf16 (cast to bf16 in-kernel)
    a_mat    : (H*W, T_pad)         bf16, shared across the batch
    convstack: (B, T_pad, Cout_pad) bf16 (includes the bias pseudo-row)
    w_x      : (C, Cout_pad)        bf16
    returns  : (B*H*W, Cout_pad)    bf16
    """
    N, C = x2d.shape
    HW, T_pad = a_mat.shape
    _, _, Cout_pad = convstack.shape
    assert HW == H * W and N == B * H * W

    budget = _vmem_budget_bytes()
    x_item = jnp.dtype(x2d.dtype).itemsize
    bytes_per_row = (2 * C * x_item          # x tiles (double-buffered)
                     + 2 * T_pad * 2         # A tiles (bf16, double-buffered)
                     + 2 * Cout_pad * 2      # out tiles (bf16, double-buffered)
                     + 2 * Cout_pad * 4)     # f32 accumulator temporaries
    fixed_bytes = (2 * C * Cout_pad * 2      # w_x double-buffer (bf16)
                   + 2 * T_pad * Cout_pad * 2)  # convstack double-buffer (bf16)
    rows_cap = (budget - fixed_bytes - (4 << 20)) // bytes_per_row
    assert rows_cap >= W, (
        "PSP bottleneck operands do not fit the VMEM budget; add a K grid "
        "axis with an f32 accumulator scratch instead of raising the limit.")

    # tile_rows = whole image rows per grid step: must divide H (blocks never
    # cross an image boundary) and give a sublane-aligned row count.
    divs = [d for d in range(1, H + 1) if H % d == 0 and (d * W) % 8 == 0]
    # TODO(synk): add a ragged / padded fallback for shapes where no divisor works.
    assert divs, "H needs a divisor d with (d*W) % 8 == 0"
    if B == 1:
        divs = [d for d in divs if d < H] or divs   # keep >=2 steps for megacore
    rows_limit = min(rows_cap, max_rows)
    cands = [d for d in divs if d * W <= rows_limit] or [min(divs)]
    pref = [d for d in cands if (d * W) % 16 == 0]  # bf16 sublane packing
    tile_rows = max(pref) if pref else max(cands)
    rows = tile_rows * W
    nblk = H // tile_rows

    vmem_need = fixed_bytes + rows * bytes_per_row
    assert vmem_need <= budget, (
        "chosen tile exceeds the generation-aware VMEM budget; add a K grid "
        "axis instead of silently clamping.")
    vmem_limit = int(min(budget, max(vmem_need + (8 << 20), 32 << 20)))

    return pl.pallas_call(
        _psp_bottleneck_kernel,
        out_shape=jax.ShapeDtypeStruct((N, Cout_pad), jnp.bfloat16),
        grid=(B, nblk),
        in_specs=[
            pl.BlockSpec((rows, C), lambda b, i: (b * nblk + i, 0)),
            pl.BlockSpec((rows, T_pad), lambda b, i: (i, 0)),
            # convstack changes only when b changes -> re-DMAed B times total.
            pl.BlockSpec((1, T_pad, Cout_pad), lambda b, i: (b, 0, 0)),
            # Constant index map -> fetched once, not per step.  (Single
            # buffering via pipeline_mode was skipped for portability; the
            # second buffer is already counted in the VMEM budget above.)
            pl.BlockSpec((C, Cout_pad), lambda b, i: (0, 0)),
        ],
        out_specs=pl.BlockSpec((rows, Cout_pad), lambda b, i: (b * nblk + i, 0)),
        compiler_params=pltpu.CompilerParams(
            dimension_semantics=("parallel", "parallel"),
            vmem_limit_bytes=vmem_limit,
        ),
    )(x2d, a_mat, convstack, w_x)


# --------------------------- resampling matrices ----------------------------

def adaptive_pool_matrix(in_size, out_size):
    """Matrix M (out, in) s.t. M @ x == AdaptiveAvgPool1d(out)(x).  (numpy)"""
    M = np.zeros((out_size, in_size), np.float32)
    for i in range(out_size):
        start = (i * in_size) // out_size
        end = -((-(i + 1) * in_size) // out_size)  # ceil((i+1)*in/out)
        M[i, start:end] = 1.0 / (end - start)
    return M


def bilinear_up_matrix(out_size, in_size):
    """Matrix U (out, in) for 1-D bilinear upsample, align_corners=False.  (numpy)"""
    M = np.zeros((out_size, in_size), np.float32)
    scale = in_size / out_size
    for i in range(out_size):
        src = max((i + 0.5) * scale - 0.5, 0.0)
        x0 = min(int(np.floor(src)), in_size - 1)
        x1 = min(x0 + 1, in_size - 1)
        lam = src - x0
        M[i, x0] += 1.0 - lam
        M[i, x1] += lam
    return M


# ------------------------------- PSP forward --------------------------------

def init_psp_params(key, features, out_features, sizes):
    """Deterministic init; weights stored already transposed to (Cin, Cout)."""
    keys = jax.random.split(key, len(sizes) + 2)
    stage_ws = []
    for i, _ in enumerate(sizes):
        bound = 1.0 / np.sqrt(features)
        stage_ws.append(jax.random.uniform(keys[i], (features, features),
                                           jnp.float32, -bound, bound))
    cin = features * (len(sizes) + 1)
    bound = 1.0 / np.sqrt(cin)
    w_bottle = jax.random.uniform(keys[-2], (cin, out_features),
                                  jnp.float32, -bound, bound)
    b_bottle = jax.random.uniform(keys[-1], (out_features,),
                                  jnp.float32, -bound, bound)
    return {"stage_weights": stage_ws, "w_bottle": w_bottle, "b_bottle": b_bottle}


def psp_forward_nhwc(x_nhwc, params, sizes):
    """Fused PSP forward on NHWC input; returns NHWC bf16 (no relayouts)."""
    B, H, W, C = x_nhwc.shape
    w_b = params["w_bottle"]            # (5C, Cout), branch order = [stages..., feats]
    b_b = params["b_bottle"]            # (Cout,)
    Cout = w_b.shape[1]
    Cout_pad = _round_up(Cout, 128)     # lane-dense output / MXU columns

    # Pyramid branches at pooled (s,s) resolution only (tiny XLA einsums); the
    # bottleneck slice commutes with pooling/upsampling so it is folded into
    # the stage conv.  The upsample itself happens inside the Pallas epilogue.
    conv_blocks, a_blocks = [], []
    for idx, (s, w_stage) in enumerate(zip(sizes, params["stage_weights"])):
        Ph = adaptive_pool_matrix(H, s)                            # (s, H)
        Pw = adaptive_pool_matrix(W, s)                            # (s, W)
        pooled = jnp.einsum("sh,bhwc,tw->bstc", Ph, x_nhwc, Pw)    # (B,s,s,C)
        w_comb = w_stage @ w_b[idx * C:(idx + 1) * C]              # (C, Cout)
        conv = jnp.einsum("bstc,cd->bstd", pooled, w_comb)         # (B,s,s,Cout)
        conv_blocks.append(conv.reshape(B, s * s, Cout))
        Uh = bilinear_up_matrix(H, s)                              # (H, s)
        Uw = bilinear_up_matrix(W, s)                              # (W, s)
        a_blocks.append((Uh[:, None, :, None] * Uw[None, :, None, :])
                        .reshape(H * W, s * s))                    # static numpy
    # Bias folded in as one extra pseudo-row with an all-ones A column.
    conv_blocks.append(jnp.broadcast_to(b_b[None, None, :], (B, 1, Cout)))
    a_blocks.append(np.ones((H * W, 1), np.float32))

    convstack = jnp.concatenate(conv_blocks, axis=1)               # (B, T, Cout) tiny
    A_np = np.concatenate(a_blocks, axis=1)                        # (H*W, T) static
    T = A_np.shape[1]
    T_pad = _round_up(T, 8)
    if T_pad != T:                                                 # tiny pads only
        A_np = np.pad(A_np, ((0, 0), (0, T_pad - T)))
        convstack = jnp.pad(convstack, ((0, 0), (0, T_pad - T), (0, 0)))
    w_x = w_b[len(sizes) * C:]                                     # (C, Cout) identity branch
    if Cout_pad != Cout:
        w_x = jnp.pad(w_x, ((0, 0), (0, Cout_pad - Cout)))
        convstack = jnp.pad(convstack, ((0, 0), (0, 0), (0, Cout_pad - Cout)))

    out = pallas_psp_bottleneck(
        x_nhwc.reshape(B * H * W, C),
        jnp.asarray(A_np, dtype=jnp.bfloat16),
        convstack.astype(jnp.bfloat16),
        w_x.astype(jnp.bfloat16),
        B=B, H=H, W=W)                                             # (N, Cout_pad) bf16
    out = out.reshape(B, H, W, Cout_pad)
    return out[..., :Cout] if Cout_pad != Cout else out


@functools.partial(jax.jit, static_argnames=("sizes",))
def psp_forward(feats_nchw, params, sizes):
    """NCHW wrapper.  Returns NCHW bf16 (cast downstream if f32 is required).

    The NCHW<->NHWC relayouts are the only remaining full-tensor XLA passes;
    keep the surrounding model in NHWC (call psp_forward_nhwc) to drop them.
    """
    # Relayout and bf16 cast fuse into a single pass under jit.
    x = jnp.transpose(feats_nchw, (0, 2, 3, 1)).astype(jnp.bfloat16)
    out = psp_forward_nhwc(x, params, sizes)
    return jnp.transpose(out, (0, 3, 1, 2))        # transpose on bf16 (half the bytes)


@functools.partial(jax.jit, static_argnames=("sizes",))
def psp_forward_ref(feats_nchw, params, sizes):
    """Plain-JAX f32 reference matching the PyTorch module (concat form)."""
    B, C, H, W = feats_nchw.shape
    x = jnp.transpose(feats_nchw, (0, 2, 3, 1))
    priors = []
    for s, w_stage in zip(sizes, params["stage_weights"]):
        Ph, Pw = adaptive_pool_matrix(H, s), adaptive_pool_matrix(W, s)
        pooled = jnp.einsum("sh,bhwc,tw->bstc", Ph, x, Pw, precision="highest")
        conv = jnp.einsum("bstc,cd->bstd", pooled, w_stage, precision="highest")
        Uh, Uw = bilinear_up_matrix(H, s), bilinear_up_matrix(W, s)
        priors.append(jnp.einsum("hs,bstc,wt->bhwc", Uh, conv, Uw,
                                 precision="highest"))
    priors.append(x)
    cat = jnp.concatenate(priors, axis=-1)
    out = jnp.maximum(
        jnp.einsum("bhwc,cd->bhwd", cat, params["w_bottle"],
                   precision="highest") + params["b_bottle"], 0.0)
    return jnp.transpose(out, (0, 3, 1, 2))


# ----------------------------------- main ------------------------------------

if __name__ == "__main__":
    B, C, H, W = 2, 4, 16, 16
    out_features = 32
    sizes = (1, 2, 3, 8)

    key = jax.random.PRNGKey(0)
    k_in, k_par = jax.random.split(key)
    feats = jax.random.normal(k_in, (B, C, H, W), jnp.float32)
    params = init_psp_params(k_par, C, out_features, sizes)

    out = jax.block_until_ready(psp_forward(feats, params, sizes=sizes))
    ref = jax.block_until_ready(psp_forward_ref(feats, params, sizes=sizes))
    assert out.shape == (B, out_features, H, W), out.shape
    # bf16 matmul operands + bf16 output (f32 accumulation) -> bf16 tolerance.
    np.testing.assert_allclose(np.asarray(out.astype(jnp.float32)),
                               np.asarray(ref), rtol=2e-2, atol=3e-2)
    print("KERNEL_OK")
</pallas_src>

<mosaic_0001>
module attributes {stable_mosaic.version = 11 : i64} {
  func.func @_psp_bottleneck_kernel(%arg0: i32, %arg1: i32, %arg2: memref<256x4xbf16, #tpu.memory_space<vmem>>, %arg3: memref<256x80xbf16, #tpu.memory_space<vmem>>, %arg4: memref<1x80x128xbf16, #tpu.memory_space<vmem>>, %arg5: memref<4x128xbf16, #tpu.memory_space<vmem>>, %arg6: memref<256x128xbf16, #tpu.memory_space<vmem>>) attributes {dimension_semantics = [#tpu.dimension_semantics<parallel>, #tpu.dimension_semantics<parallel>], iteration_bounds = array<i64: 2, 1>, scalar_prefetch = 0 : i64, scratch_operands = 0 : i64, tpu.core_type = #tpu.core_type<tc>, window_params = [{transform_indices = @transform_0, window_bounds = array<i64: 256, 4>}, {transform_indices = @transform_1, window_bounds = array<i64: 256, 80>}, {transform_indices = @transform_2, window_bounds = array<i64: 1, 80, 128>}, {pipeline_mode = #tpu.pipeline_mode<synchronous>, transform_indices = @transform_3, window_bounds = array<i64: 4, 128>}, {transform_indices = @transform_4, window_bounds = array<i64: 256, 128>}]} {
    %c0 = arith.constant 0 : index
    %c0_0 = arith.constant 0 : index
    %0 = vector.load %arg2[%c0, %c0_0] : memref<256x4xbf16, #tpu.memory_space<vmem>>, vector<256x4xbf16>
    %c0_1 = arith.constant 0 : index
    %c0_2 = arith.constant 0 : index
    %1 = vector.load %arg5[%c0_1, %c0_2] : memref<4x128xbf16, #tpu.memory_space<vmem>>, vector<4x128xbf16>
    %cst = arith.constant dense<0.000000e+00> : vector<256x128xf32>
    %2 = tpu.matmul %0, %1, %cst {dimension_numbers = #tpu.dot_dimension_numbers<[1], [0], [0], [1], [0, 0, 1, 1], [], []>} : vector<256x4xbf16>, vector<4x128xbf16>, vector<256x128xf32> -> vector<256x128xf32>
    %c0_3 = arith.constant 0 : index
    %c0_4 = arith.constant 0 : index
    %3 = vector.load %arg3[%c0_3, %c0_4] : memref<256x80xbf16, #tpu.memory_space<vmem>>, vector<256x80xbf16>
    %c0_5 = arith.constant 0 : index
    %c0_6 = arith.constant 0 : index
    %c0_7 = arith.constant 0 : index
    %4 = vector.load %arg4[%c0_5, %c0_6, %c0_7] : memref<1x80x128xbf16, #tpu.memory_space<vmem>>, vector<1x80x128xbf16>
    %5 = vector.shape_cast %4 : vector<1x80x128xbf16> to vector<80x128xbf16>
    %cst_8 = arith.constant dense<0.000000e+00> : vector<256x128xf32>
    %6 = tpu.matmul %3, %5, %cst_8 {dimension_numbers = #tpu.dot_dimension_numbers<[1], [0], [0], [1], [0, 0, 1, 1], [], []>} : vector<256x80xbf16>, vector<80x128xbf16>, vector<256x128xf32> -> vector<256x128xf32>
    %7 = arith.addf %2, %6 : vector<256x128xf32>
    %cst_9 = arith.constant 0.000000e+00 : f32
    %8 = vector.broadcast %cst_9 : f32 to vector<256x128xf32>
    %9 = arith.maximumf %7, %8 : vector<256x128xf32>
    %10 = arith.truncf %9 : vector<256x128xf32> to vector<256x128xbf16>
    %c0_10 = arith.constant 0 : index
    %c0_11 = arith.constant 0 : index
    %11 = vector.load %arg6[%c0_10, %c0_11] : memref<256x128xbf16, #tpu.memory_space<vmem>>, vector<256x128xbf16>
    tpu.vector_store %arg6[%c0_10, %c0_11], %10 {strides = array<i32>} : memref<256x128xbf16, #tpu.memory_space<vmem>>, vector<256x128xbf16>,
    return
  }
  func.func @transform_0(%arg0: i32, %arg1: i32) -> (i32, i32) {
    %c1_i32 = arith.constant 1 : i32
    %0 = arith.muli %arg0, %c1_i32 : i32
    %1 = arith.addi %0, %arg1 : i32
    %c0_i32 = arith.constant 0 : i32
    %c0_i32_0 = arith.constant 0 : i32
    return %1, %c0_i32 : i32, i32
  }
  func.func @transform_1(%arg0: i32, %arg1: i32) -> (i32, i32) {
    %c0_i32 = arith.constant 0 : i32
    %c0_i32_0 = arith.constant 0 : i32
    return %arg1, %c0_i32 : i32, i32
  }
  func.func @transform_2(%arg0: i32, %arg1: i32) -> (i32, i32, i32) {
    %c0_i32 = arith.constant 0 : i32
    %c0_i32_0 = arith.constant 0 : i32
    %c0_i32_1 = arith.constant 0 : i32
    return %arg0, %c0_i32, %c0_i32_0 : i32, i32, i32
  }
  func.func @transform_3(%arg0: i32, %arg1: i32) -> (i32, i32) {
    %c0_i32 = arith.constant 0 : i32
    %c0_i32_0 = arith.constant 0 : i32
    %c0_i32_1 = arith.constant 0 : i32
    return %c0_i32, %c0_i32_0 : i32, i32
  }
  func.func @transform_4(%arg0: i32, %arg1: i32) -> (i32, i32) {
    %c1_i32 = arith.constant 1 : i32
    %0 = arith.muli %arg0, %c1_i32 : i32
    %1 = arith.addi %0, %arg1 : i32
    %c0_i32 = arith.constant 0 : i32
    %c0_i32_0 = arith.constant 0 : i32
    return %1, %c0_i32 : i32, i32
  }
}

</mosaic_0001>

<bundles_post_ra>
// kernel: psp_forward.1
= control target key start
LH: loop header
LB: loop body
LE: loop exit
PB: predicated region body
PF: predicated region fallthrough
CT: control target
= control target key end

     0   :  { %s1711_s15 = smov 0   ;;  %s1713_s16 = smov 0   ;;  %s1873_s0 = inlined_call_operand.vmem [shape: bf16[512,4], index: 0, kind: input, shape index: {}]   ;;  %s1874_s1 = inlined_call_operand.vmem [shape: bf16[256,80], index: 1, kind: input, shape index: {}]   ;;  %s1875_s2 = inlined_call_operand.vmem [shape: bf16[2,80,128], index: 2, kind: input, shape index: {}]   ;;  %s1876_s3 = inlined_call_operand.vmem [shape: bf16[4,128], index: 3, kind: input, shape index: {}]   ;;  %s1877_s4 = inlined_call_operand.vmem [shape: bf16[512,128], index: 4, kind: output, shape index: {}]  }
   0x1   :  { %s1715_s17 = smov 0  }
   0x2 LB: > { %s26_s18 = sadd.s32 1, %s1680_s16  ;;  %p1249_p0 = scmp.ge.s32.totalorder %s1684_s17, 1  ;;  %s1684_s17 = sphi %s1715_s17, %s14_s17   ;;  %s1680_s16 = sphi %s1713_s16, %s1879_s16   ;;  %s1676_s15 = sphi %s1711_s15, %s1878_s15  }
   0x3   : > { %p28_p1 = scmp.ge.s32.totalorder %s26_s18, 2  ;;  %p202_p2 = scmp.lt.s32.totalorder %s1684_s17, 3 }
   0x5   : > { %s1881_s18 = smov (%p28_p1, %s26_s18), 0  ;;  %p203_p3 = pnand %p1249_p0, %p202_p2 }
   0x6   : > { %p254_p4 = scmp.lt.s32.totalorder (!%p203_p3), %s1676_s15, 1  ;;  %s1250_s21 = sshll.u32 (!%p203_p3), %s1676_s15, 5 }
   0x7   : > { %206 = sbr.rel (%p203_p3) target bundleno = 299 (0x12b), region = 36  ;;  %p242_p5 = scmp.lt.s32.totalorder (!%p203_p3), %s1250_s21, 63 }
   0xc   : > { %v300_v0 = vld [vmem:[%s1876_s3] sm:$0x3]  ;;  %vm792_vm0 = vcmask 1041408   ;;  %s1883_s15 = smov (!%p254_p4, %s1676_s15), 1  ;;  %vm453_vm1 = vcmask 654336   ;;  %s1885_s21 = smov (!%p242_p5, %s1250_s21), 63 }
   0xd   : > { %1599 = vmatprep.subr.msk.bf16.mxu1 %vm792_vm0, %v300_v0  ;;  %v794_v1 = vsel %vm792_vm0, %v300_v0, 0  ;;  %v1632_v2 = vld [vmem:[%s1874_s1] sm:$0xff]   ;;  %s1600_s24 = smul.u32 40, %s1883_s15  ;;  %s1251_s25 = sshll.u32 %s1885_s21, 2  ;;  %vm743_vm2 = vcmask 31744   ;;  %v1633_v13 = vld [vmem:[%s1874_s1 + $0x8] sm:$0xff]  }
   0xe   : > { %1566 = vmatpush3.bf16.msra.mxu1 %v794_v1  ;;  %1533 = vmatprep.mubr.msk.bf16.mxu0 %vm453_vm1, %v1632_v2  ;;  %s1747_s5 = scalar_lea.vmem %s1873_s0, %s1251_s25  ;;  %v1636_v14 = vld [vmem:[%s1874_s1 + $0x10] sm:$0xff]   ;;  %v1637_v17 = vld [vmem:[%s1874_s1 + $0x18] sm:$0xff]   ;;  %v1640_v18 = vld [vmem:[%s1874_s1 + $0x20] sm:$0xff]   ;;  %s1846_s20 = scalar_lea.vmem %s1877_s4, %s1251_s25 }
   0xf   : > { %s258_s28 = scalar_lea.vmem %s1875_s2, %s1600_s24  ;;  %v1629_v6 = vld [vmem:[%s1747_s5] sm:$0xff]   ;;  %v1630_v7 = vld [vmem:[%s1747_s5 + $0x8] sm:$0xff]   ;;  %v1634_v8 = vld [vmem:[%s1747_s5 + $0x10] sm:$0xff]  }
  0x10   : > { %v1625_v3 = vld [vmem:[%s258_s28 + $0x20] sm:$0xff]   ;;  %v1626_v4 = vld [vmem:[%s258_s28 + $0x18] sm:$0xff]   ;;  %v1627_v5 = vld [vmem:[%s258_s28 + $0x10] sm:$0xff]   ;;  %1567 = vmatprep.mubr.msk.bf16.mxu1 %vm743_vm2, %v1629_v6 }
  0x11   : > { %1523 = vmatprep.subr.bf16.mxu0 %v1625_v3  ;;  %1568 = vmatmul.mubr.msk.bf16.vlgmr.msra.gmra.mxu1 %vm743_vm2, %v1630_v7  ;;  %v1628_v9 = vld [vmem:[%s258_s28 + $0x8] sm:$0xff]   ;;  %v1631_v10 = vld [vmem:[%s258_s28] sm:$0xff]   ;;  %v1635_v11 = vld [vmem:[%s1747_s5 + $0x18] sm:$0xff]  }
  0x12   : > { %1524 = vmatpush3.bf16.msra.mxu0 %v1625_v3  ;;  %1571 = vmatprep.mubr.msk.bf16.mxu1 %vm743_vm2, %v1634_v8  ;;  %v1638_v12 = vld [vmem:[%s1747_s5 + $0x20] sm:$0xff]   ;;  %v1639_v15 = vld [vmem:[%s1747_s5 + $0x28] sm:$0xff]   ;;  %v1642_v16 = vld [vmem:[%s1747_s5 + $0x30] sm:$0xff]  }
  0x13   : > { %1525 = vmatprep.subr.bf16.mxu0 %v1626_v4  ;;  %v1643_v19 = vld [vmem:[%s1747_s5 + $0x38] sm:$0xff]   ;;  %v1646_v20 = vld [vmem:[%s1747_s5 + $0x40] sm:$0xff]   ;;  %v1641_v21 = vld [vmem:[%s1874_s1 + $0x28] sm:$0xff]  }
  0x14   : > { %v1644_v22 = vld [vmem:[%s1874_s1 + $0x30] sm:$0xff]   ;;  %v1647_v23 = vld [vmem:[%s1747_s5 + $0x48] sm:$0xff]   ;;  %v1645_v25 = vld [vmem:[%s1874_s1 + $0x38] sm:$0xff]  }
  0x15   : > { %v1650_v24 = vld [vmem:[%s1747_s5 + $0x50] sm:$0xff]   ;;  %v1648_v26 = vld [vmem:[%s1874_s1 + $0x40] sm:$0xff]   ;;  %v1651_v27 = vld [vmem:[%s1747_s5 + $0x58] sm:$0xff]  }
  0x16   : > { %1526 = vmatpush3.bf16.msra.mxu0 %v1626_v4  ;;  %v1654_v28 = vld [vmem:[%s1747_s5 + $0x60] sm:$0xff]   ;;  %v1649_v29 = vld [vmem:[%s1874_s1 + $0x48] sm:$0xff]   ;;  %v1652_v30 = vld [vmem:[%s1874_s1 + $0x50] sm:$0xff]  }
  0x17   : > { %1527 = vmatprep.subr.bf16.mxu0 %v1627_v5  ;;  %v1655_v31 = vld [vmem:[%s1747_s5 + $0x68] sm:$0xff]   ;;  %v1658_v32 = vld [vmem:[%s1747_s5 + $0x70] sm:$0xff]   ;;  %v1653_v33 = vld [vmem:[%s1874_s1 + $0x58] sm:$0xff]  }
  0x18   : > { %v1656_v34 = vld [vmem:[%s1874_s1 + $0x60] sm:$0xff]   ;;  %v1659_v35 = vld [vmem:[%s1747_s5 + $0x78] sm:$0xff]   ;;  %v1657_v36 = vld [vmem:[%s1874_s1 + $0x68] sm:$0xff]  }
  0x19   : > { %1572 = vmatmul.mubr.msk.bf16.gmra.mxu1 %vm743_vm2, %v1635_v11  ;;  %v1660_v37 = vld [vmem:[%s1874_s1 + $0x70] sm:$0xff]   ;;  %v1661_v38 = vld [vmem:[%s1874_s1 + $0x78] sm:$0xff]  }
  0x1a   : > { %1528 = vmatpush3.bf16.msra.mxu0 %v1627_v5  ;;  %1575 = vmatprep.mubr.msk.bf16.mxu1 %vm743_vm2, %v1638_v12 }
  0x1b   : > { %1529 = vmatprep.subr.bf16.mxu0 %v1628_v9 }
  0x1e   : > { %1530 = vmatpush3.bf16.msra.mxu0 %v1628_v9 }
  0x1f   : > { %1531 = vmatprep.subr.bf16.mxu0 %v1631_v10 }
  0x21   : > { %1576 = vmatmul.mubr.msk.bf16.gmra.mxu1 %vm743_vm2, %v1639_v15 }
  0x22   : > { %1532 = vmatpush3.bf16.msra.mxu0 %v1631_v10  ;;  %1579 = vmatprep.mubr.msk.bf16.mxu1 %vm743_vm2, %v1642_v16 }
  0x25   : > { %1534 = vmatmul.mubr.msk.bf16.vlgmr.msra.gmra.mxu0 %vm453_vm1, %v1633_v13 }
  0x26   : > { %1537 = vmatprep.mubr.msk.bf16.mxu0 %vm453_vm1, %v1636_v14 }
  0x29   : > { %1580 = vmatmul.mubr.msk.bf16.gmra.mxu1 %vm743_vm2, %v1643_v19 }
  0x2a   : > { %1583 = vmatprep.mubr.msk.bf16.mxu1 %vm743_vm2, %v1646_v20 }
  0x2d   : > { %1538 = vmatmul.mubr.msk.bf16.gmra.mxu0 %vm453_vm1, %v1637_v17 }
  0x2e   : > { %1541 = vmatprep.mubr.msk.bf16.mxu0 %vm453_vm1, %v1640_v18 }
  0x31   : > { %1584 = vmatmul.mubr.msk.bf16.gmra.mxu1 %vm743_vm2, %v1647_v23 }
  0x32   : > { %1587 = vmatprep.mubr.msk.bf16.mxu1 %vm743_vm2, %v1650_v24 }
  0x35   : > { %1542 = vmatmul.mubr.msk.bf16.gmra.mxu0 %vm453_vm1, %v1641_v21 }
  0x36   : > { %1545 = vmatprep.mubr.msk.bf16.mxu0 %vm453_vm1, %v1644_v22 }
  0x39   : > { %1588 = vmatmul.mubr.msk.bf16.gmra.mxu1 %vm743_vm2, %v1651_v27 }
  0x3a   : > { %1591 = vmatprep.mubr.msk.bf16.mxu1 %vm743_vm2, %v1654_v28 }
  0x3d   : > { %1546 = vmatmul.mubr.msk.bf16.gmra.mxu0 %vm453_vm1, %v1645_v25 }
  0x3e   : > { %1549 = vmatprep.mubr.msk.bf16.mxu0 %vm453_vm1, %v1648_v26 }
  0x41   : > { %1592 = vmatmul.mubr.msk.bf16.gmra.mxu1 %vm743_vm2, %v1655_v31 }
  0x42   : > { %1595 = vmatprep.mubr.msk.bf16.mxu1 %vm743_vm2, %v1658_v32 }
  0x45   : > { %1550 = vmatmul.mubr.msk.bf16.gmra.mxu0 %vm453_vm1, %v1649_v29 }
  0x46   : > { %1553 = vmatprep.mubr.msk.bf16.mxu0 %vm453_vm1, %v1652_v30 }
  0x49   : > { %1596 = vmatmul.mubr.msk.bf16.gmra.mxu1 %vm743_vm2, %v1659_v35 }
  0x4d   : > { %1554 = vmatmul.mubr.msk.bf16.gmra.mxu0 %vm453_vm1, %v1653_v33 }
  0x4e   : > { %1557 = vmatprep.mubr.msk.bf16.mxu0 %vm453_vm1, %v1656_v34 }
  0x55   : > { %1558 = vmatmul.mubr.msk.bf16.gmra.mxu0 %vm453_vm1, %v1657_v36 }
  0x56   : > { %1561 = vmatprep.mubr.msk.bf16.mxu0 %vm453_vm1, %v1660_v37 }
  0x5d   : > { %1562 = vmatmul.mubr.msk.bf16.gmra.mxu0 %vm453_vm1, %v1661_v38 }
  0xd1   : > { %v1569_v39 = vpop.f32.mrf.mxu1 }
  0xd3   : > { %v830_v40 = vpop.f32.mrf.mxu1 }
  0xd5   : > { %v1570_v41 = vpop.f32.mrf.mxu1 }
  0xd7   : > { %v833_v42 = vpop.f32.mrf.mxu1 }
  0xd9   : > { %v1573_v43 = vpop.f32.mrf.mxu1 }
  0xdb   : > { %v846_v44 = vpop.f32.mrf.mxu1 }
  0xdd   : > { %v1574_v45 = vpop.f32.mrf.mxu1 }
  0xdf   : > { %v849_v46 = vpop.f32.mrf.mxu1 }
  0xe1   : > { %v1577_v48 = vpop.f32.mrf.mxu1 }
  0xe3   : > { %v862_v51 = vpop.f32.mrf.mxu1 }
  0xe5   : > { %v1535_v47 = vpop.f32.mrf.mxu0  ;;  %v1578_v55 = vpop.f32.mrf.mxu1 }
  0xe6   : > { %v839_v50 = vadd.f32 %v1569_v39, %v1535_v47 }
  0xe7   : > { %v536_v49 = vpop.f32.mrf.mxu0  ;;  %v865_v60 = vpop.f32.mrf.mxu1 }
  0xe8   : > { %v831_v53 = vadd.f32 %v830_v40, %v536_v49  ;;  %v959_v57 = vmax.f32 %v839_v50, 0.0 }
  0xe9   : > { %v1536_v52 = vpop.f32.mrf.mxu0  ;;  %v1581_v1 = vpop.f32.mrf.mxu1 }
  0xea   : > { %v842_v54 = vadd.f32 %v1570_v41, %v1536_v52  ;;  %v957_v62 = vmax.f32 %v831_v53, 0.0 }
  0xeb   : > { %v539_v56 = vpop.f32.mrf.mxu0  ;;  %v878_v5 = vpop.f32.mrf.mxu1 }
  0xec   : > { %v960_v58 = vmax.f32 %v842_v54, 0.0  ;;  %v834_v59 = vadd.f32 %v833_v42, %v539_v56 }
  0xed   : > { %v1539_v61 = vpop.f32.mrf.mxu0  ;;  %v1582_v9 = vpop.f32.mrf.mxu1 }
  0xee   : > { %v1398_v63 = vpack.c.bf16 %v960_v58, %v959_v57  ;;  %v958_v0 = vmax.f32 %v834_v59, 0.0  ;;  %v855_v4 = vadd.f32 %v1573_v43, %v1539_v61 }
  0xef   : > { %v552_v2 = vpop.f32.mrf.mxu0  ;;  %v881_v14 = vpop.f32.mrf.mxu1 }
  0xf0   : > { %1470 = vst [vmem:[%s1846_s20 + $0x8] sm:$0xff] %v1398_v63   ;;  %v1393_v3 = vpack.c.bf16 %v958_v0, %v957_v62  ;;  %v847_v7 = vadd.f32 %v846_v44, %v552_v2  ;;  %v963_v11 = vmax.f32 %v855_v4, 0.0 }
  0xf1   : > { %v1540_v6 = vpop.f32.mrf.mxu0  ;;  %v1585_v19 = vpop.f32.mrf.mxu1 }
  0xf2   : > { %1394 = vst [vmem:[%s1846_s20] sm:$0xff] %v1393_v3   ;;  %v858_v8 = vadd.f32 %v1574_v45, %v1540_v6  ;;  %v961_v16 = vmax.f32 %v847_v7, 0.0 }
  0xf3   : > { %v555_v10 = vpop.f32.mrf.mxu0  ;;  %v894_v23 = vpop.f32.mrf.mxu1 }
  0xf4   : > { %v964_v12 = vmax.f32 %v858_v8, 0.0  ;;  %v850_v13 = vadd.f32 %v849_v46, %v555_v10 }
  0xf5   : > { %v1543_v15 = vpop.f32.mrf.mxu0  ;;  %v1586_v27 = vpop.f32.mrf.mxu1 }
  0xf6   : > { %v1408_v17 = vpack.c.bf16 %v964_v12, %v963_v11  ;;  %v962_v18 = vmax.f32 %v850_v13, 0.0  ;;  %v871_v22 = vadd.f32 %v1577_v48, %v1543_v15 }
  0xf7   : > { %v568_v20 = vpop.f32.mrf.mxu0  ;;  %v897_v32 = vpop.f32.mrf.mxu1 }
  0xf8   : > { %1472 = vst [vmem:[%s1846_s20 + $0x18] sm:$0xff] %v1408_v17   ;;  %v1403_v21 = vpack.c.bf16 %v962_v18, %v961_v16  ;;  %v863_v25 = vadd.f32 %v862_v51, %v568_v20  ;;  %v967_v29 = vmax.f32 %v871_v22, 0.0 }
  0xf9   : > { %v1544_v24 = vpop.f32.mrf.mxu0  ;;  %v1589_v37 = vpop.f32.mrf.mxu1 }
  0xfa   : > { %1471 = vst [vmem:[%s1846_s20 + $0x10] sm:$0xff] %v1403_v21   ;;  %v874_v26 = vadd.f32 %v1578_v55, %v1544_v24  ;;  %v965_v34 = vmax.f32 %v863_v25, 0.0 }
  0xfb   : > { %v571_v28 = vpop.f32.mrf.mxu0  ;;  %v910_v41 = vpop.f32.mrf.mxu1 }
  0xfc   : > { %v968_v30 = vmax.f32 %v874_v26, 0.0  ;;  %v866_v31 = vadd.f32 %v865_v60, %v571_v28 }
  0xfd   : > { %v1547_v33 = vpop.f32.mrf.mxu0  ;;  %v1590_v45 = vpop.f32.mrf.mxu1 }
  0xfe   : > { %v1418_v35 = vpack.c.bf16 %v968_v30, %v967_v29  ;;  %v966_v36 = vmax.f32 %v866_v31, 0.0  ;;  %v887_v40 = vadd.f32 %v1581_v1, %v1547_v33 }
  0xff   : > { %v584_v38 = vpop.f32.mrf.mxu0  ;;  %v913_v50 = vpop.f32.mrf.mxu1 }
 0x100   : > { %1474 = vst [vmem:[%s1846_s20 + $0x28] sm:$0xff] %v1418_v35   ;;  %v1413_v39 = vpack.c.bf16 %v966_v36, %v965_v34  ;;  %v879_v43 = vadd.f32 %v878_v5, %v584_v38  ;;  %v971_v47 = vmax.f32 %v887_v40, 0.0 }
 0x101   : > { %v1548_v42 = vpop.f32.mrf.mxu0  ;;  %v1593_v56 = vpop.f32.mrf.mxu1 }
 0x102   : > { %1473 = vst [vmem:[%s1846_s20 + $0x20] sm:$0xff] %v1413_v39   ;;  %v890_v44 = vadd.f32 %v1582_v9, %v1548_v42  ;;  %v969_v52 = vmax.f32 %v879_v43, 0.0 }
 0x103   : > { %v587_v46 = vpop.f32.mrf.mxu0  ;;  %v926_v63 = vpop.f32.mrf.mxu1 }
 0x104   : > { %v972_v48 = vmax.f32 %v890_v44, 0.0  ;;  %v882_v49 = vadd.f32 %v881_v14, %v587_v46 }
 0x105   : > { %v1551_v51 = vpop.f32.mrf.mxu0  ;;  %v1594_v8 = vpop.f32.mrf.mxu1 }
 0x106   : > { %v1428_v53 = vpack.c.bf16 %v972_v48, %v971_v47  ;;  %v970_v54 = vmax.f32 %v882_v49, 0.0  ;;  %v903_v58 = vadd.f32 %v1585_v19, %v1551_v51 }
 0x107   : > { %v600_v55 = vpop.f32.mrf.mxu0  ;;  %v929_v15 = vpop.f32.mrf.mxu1 }
 0x108   : > { %1476 = vst [vmem:[%s1846_s20 + $0x38] sm:$0xff] %v1428_v53   ;;  %v1423_v57 = vpack.c.bf16 %v970_v54, %v969_v52  ;;  %v895_v60 = vadd.f32 %v894_v23, %v600_v55  ;;  %v975_v0 = vmax.f32 %v903_v58, 0.0 }
 0x109   : > { %v1552_v59 = vpop.f32.mrf.mxu0  ;;  %v1597_v24 = vpop.f32.mrf.mxu1 }
 0x10a   : > { %1475 = vst [vmem:[%s1846_s20 + $0x30] sm:$0xff] %v1423_v57   ;;  %v906_v61 = vadd.f32 %v1586_v27, %v1552_v59  ;;  %v973_v4 = vmax.f32 %v895_v60, 0.0 }
 0x10b   : > { %v603_v62 = vpop.f32.mrf.mxu0  ;;  %v942_v30 = vpop.f32.mrf.mxu1 }
 0x10c   : > { %v976_v1 = vmax.f32 %v906_v61, 0.0  ;;  %v898_v2 = vadd.f32 %v897_v32, %v603_v62 }
 0x10d   : > { %v1555_v3 = vpop.f32.mrf.mxu0  ;;  %v1598_v39 = vpop.f32.mrf.mxu1 }
 0x10e   : > { %v1438_v5 = vpack.c.bf16 %v976_v1, %v975_v0  ;;  %v974_v6 = vmax.f32 %v898_v2, 0.0  ;;  %v919_v10 = vadd.f32 %v1589_v37, %v1555_v3 }
 0x10f   : > { %v616_v7 = vpop.f32.mrf.mxu0  ;;  %v945_v46 = vpop.f32.mrf.mxu1 }
 0x110   : > { %1478 = vst [vmem:[%s1846_s20 + $0x48] sm:$0xff] %v1438_v5   ;;  %v1433_v9 = vpack.c.bf16 %v974_v6, %v973_v4  ;;  %v911_v12 = vadd.f32 %v910_v41, %v616_v7  ;;  %v979_v16 = vmax.f32 %v919_v10, 0.0 }
 0x111   : > { %v1556_v11 = vpop.f32.mrf.mxu0 }
 0x112   : > { %1477 = vst [vmem:[%s1846_s20 + $0x40] sm:$0xff] %v1433_v9   ;;  %v922_v13 = vadd.f32 %v1590_v45, %v1556_v11  ;;  %v977_v20 = vmax.f32 %v911_v12, 0.0 }
 0x113   : > { %v619_v14 = vpop.f32.mrf.mxu0 }
 0x114   : > { %v980_v17 = vmax.f32 %v922_v13, 0.0  ;;  %v914_v18 = vadd.f32 %v913_v50, %v619_v14 }
 0x115   : > { %v1559_v19 = vpop.f32.mrf.mxu0 }
 0x116   : > { %v1448_v21 = vpack.c.bf16 %v980_v17, %v979_v16  ;;  %v978_v22 = vmax.f32 %v914_v18, 0.0  ;;  %v935_v26 = vadd.f32 %v1593_v56, %v1559_v19 }
 0x117   : > { %v632_v23 = vpop.f32.mrf.mxu0 }
 0x118   : > { %1480 = vst [vmem:[%s1846_s20 + $0x58] sm:$0xff] %v1448_v21   ;;  %v1443_v25 = vpack.c.bf16 %v978_v22, %v977_v20  ;;  %v927_v28 = vadd.f32 %v926_v63, %v632_v23  ;;  %v983_v32 = vmax.f32 %v935_v26, 0.0 }
 0x119   : > { %v1560_v27 = vpop.f32.mrf.mxu0 }
 0x11a   : > { %1479 = vst [vmem:[%s1846_s20 + $0x50] sm:$0xff] %v1443_v25   ;;  %v938_v29 = vadd.f32 %v1594_v8, %v1560_v27  ;;  %v981_v36 = vmax.f32 %v927_v28, 0.0 }
 0x11b   : > { %v635_v31 = vpop.f32.mrf.mxu0 }
 0x11c   : > { %v984_v33 = vmax.f32 %v938_v29, 0.0  ;;  %v930_v34 = vadd.f32 %v929_v15, %v635_v31 }
 0x11d   : > { %v1563_v35 = vpop.f32.mrf.mxu0 }
 0x11e   : > { %v1458_v37 = vpack.c.bf16 %v984_v33, %v983_v32  ;;  %v982_v38 = vmax.f32 %v930_v34, 0.0  ;;  %v951_v42 = vadd.f32 %v1597_v24, %v1563_v35 }
 0x11f   : > { %v648_v40 = vpop.f32.mrf.mxu0 }
 0x120   : > { %1482 = vst [vmem:[%s1846_s20 + $0x68] sm:$0xff] %v1458_v37   ;;  %v1453_v41 = vpack.c.bf16 %v982_v38, %v981_v36  ;;  %v943_v44 = vadd.f32 %v942_v30, %v648_v40  ;;  %v987_v48 = vmax.f32 %v951_v42, 0.0 }
 0x121   : > { %v1564_v43 = vpop.f32.mrf.mxu0 }
 0x122   : > { %1481 = vst [vmem:[%s1846_s20 + $0x60] sm:$0xff] %v1453_v41   ;;  %v954_v45 = vadd.f32 %v1598_v39, %v1564_v43  ;;  %v985_v51 = vmax.f32 %v943_v44, 0.0 }
 0x123   : > { %v651_v47 = vpop.f32.mrf.mxu0 }
 0x124   : > { %v988_v49 = vmax.f32 %v954_v45, 0.0  ;;  %v946_v50 = vadd.f32 %v945_v46, %v651_v47 }
 0x126   : > { %v1468_v52 = vpack.c.bf16 %v988_v49, %v987_v48  ;;  %v986_v53 = vmax.f32 %v946_v50, 0.0 }
 0x128   : > { %1484 = vst [vmem:[%s1846_s20 + $0x78] sm:$0xff] %v1468_v52   ;;  %v1463_v54 = vpack.c.bf16 %v986_v53, %v985_v51 }
 0x12a   : > { %1483 = vst [vmem:[%s1846_s20 + $0x70] sm:$0xff] %v1463_v54  }
 0x12b PF: > { %s14_s17 = sadd.s32 1, %s1684_s17   ;;  %s1878_s15 = smov %s1680_s16 }
 0x12c   : > { %p11_p6 = scmp.ge.s32.totalorder %s14_s17, 4   ;;  %s1879_s16 = smov %s1881_s18 }
 0x12e   :  { %13 = sbr.rel (!%p11_p6) target bundleno = 2 (0x2), region = 72 }

</bundles_post_ra>
